<compile_context>
chip_gen: v7x
topology: tpu7x:2x2x1
jax: 0.10.0
libtpu: 0.0.40
codegen_flags: <defaults>
</compile_context>

<pallas_src>
import functools

import jax
import jax.numpy as jnp
from jax import lax
from jax.experimental import pallas as pl
from jax.experimental.pallas import tpu as pltpu


# ----------------------------------------------------------------------------
# Shared conv body: width-folded matmul, bf16 operands, f32 accumulation.
# ----------------------------------------------------------------------------
def _conv_acc(xf_ref, b_ref, H):
    # xf_ref : (1, H+2, (W+2)*Cin) bf16   padded input rows, (w, ci) on lanes
    # b_ref  : (3, (W+2)*Cin, W*Cout) bf16 conv matrix per ky tap (VMEM-resident)
    acc = jnp.dot(xf_ref[0, 0:H, :], b_ref[0], preferred_element_type=jnp.float32)
    for ky in (1, 2):  # static unroll, 3 accumulated MXU dots
        acc = acc + jnp.dot(xf_ref[0, ky:ky + H, :], b_ref[ky],
                            preferred_element_type=jnp.float32)
    return acc  # (H, W*Cout) f32


# ----------------------------------------------------------------------------
# Kernel A: stats-only pass.  conv -> (drop, bias) -> per-batch partial sum/sumsq.
# ----------------------------------------------------------------------------
def conv_stats_kernel(xf_ref, b_ref, dr_ref, bd_ref, s_ref, sq_ref):
    # dr_ref : (1, 1, W*Cout) f32  dropout scale tiled over w       (per batch elem)
    # bd_ref : (1, 1, W*Cout) f32  bias*dropout scale tiled over w  (per batch elem)
    # s_ref  : (1, 1, W*Cout) f32  partial sum over h
    # sq_ref : (1, 1, W*Cout) f32  partial sumsq over h
    H = xf_ref.shape[1] - 2
    acc = _conv_acc(xf_ref, b_ref, H)
    y = acc * dr_ref[0] + bd_ref[0]                      # (H, WC)
    s_ref[...] = jnp.sum(y, axis=0, keepdims=True)[None]
    sq_ref[...] = jnp.sum(y * y, axis=0, keepdims=True)[None]


# ----------------------------------------------------------------------------
# Kernel B: final pass.  conv recompute -> folded dropout+bias+BN affine -> LeakyReLU.
# ----------------------------------------------------------------------------
def conv_bn_lrelu_kernel(xf_ref, b_ref, a_ref, c_ref, o_ref, *, negative_slope):
    # a_ref : (1, 1, W*Cout) f32  drop*scale tiled over w                (per batch elem)
    # c_ref : (1, 1, W*Cout) f32  bias*drop*scale + shift tiled over w   (per batch elem)
    # o_ref : (1, H, W*Cout) f32  lane-dense output block
    H = o_ref.shape[1]
    acc = _conv_acc(xf_ref, b_ref, H)
    z = acc * a_ref[0] + c_ref[0]                        # (H, WC)
    o_ref[...] = jnp.where(z >= 0, z, negative_slope * z)[None]


# ----------------------------------------------------------------------------
# Wrapper
# ----------------------------------------------------------------------------
def conv_dropout_norm_nonlin(x_nchw, w_hwio, bias, gamma, beta, drop_scale,
                             *, eps=1e-5, negative_slope=0.01):
    N, Cin, H, W = x_nchw.shape
    Cout = w_hwio.shape[-1]
    Wp = W + 2
    K = Wp * Cin            # contraction depth per ky tap
    WC = W * Cout           # lane axis of the conv output / stats / final output

    # Input: NCHW -> NHWC, 1-px zero pad, flatten (W+2, Cin) onto lanes, cast bf16.
    x = jnp.transpose(x_nchw, (0, 2, 3, 1)).astype(jnp.float32)
    xf = jnp.pad(x, ((0, 0), (1, 1), (1, 1), (0, 0))) \
            .reshape(N, H + 2, K).astype(jnp.bfloat16)

    # Width-folded conv matrix:  B[ky, wp*Cin+ci, w*Cout+co] = w[ky, wp-w, ci, co]
    # if 0 <= wp-w <= 2 else 0.  Size scales with W*Cout -> intended for small layers.
    kx = jnp.arange(3)[:, None, None]
    wp = jnp.arange(Wp)[None, :, None]
    wo = jnp.arange(W)[None, None, :]
    sel = (wp == wo + kx).astype(jnp.float32)                 # (3, W+2, W)
    Bm = jnp.einsum("xpw,yxio->ypiwo", sel, w_hwio.astype(jnp.float32))
    Bm = Bm.reshape(3, K, WC).astype(jnp.bfloat16)            # (3, K, W*Cout)

    # Per-(n, channel) factors for the stats pass, tiled over w to match (w, co) lanes.
    drop_f = drop_scale.astype(jnp.float32)                   # (N, Cout)
    bias_f = bias.astype(jnp.float32)
    dr = jnp.tile(drop_f, (1, W)).reshape(N, 1, WC)
    bd = jnp.tile(bias_f[None, :] * drop_f, (1, W)).reshape(N, 1, WC)

    grid_params = pltpu.CompilerParams(
        # no carried accumulator -> batch axis runs on both v7x TensorCores
        dimension_semantics=("parallel",),
        vmem_limit_bytes=32 * 1024 * 1024,
    )

    # ---- Pass A: per-batch partial BN statistics (no y writeback). ----
    s, sq = pl.pallas_call(
        conv_stats_kernel,
        out_shape=(
            jax.ShapeDtypeStruct((N, 1, WC), jnp.float32),
            jax.ShapeDtypeStruct((N, 1, WC), jnp.float32),
        ),
        grid_spec=pltpu.PrefetchScalarGridSpec(
            num_scalar_prefetch=0,
            grid=(N,),
            in_specs=[
                pl.BlockSpec((1, H + 2, K), lambda n: (n, 0, 0)),
                pl.BlockSpec((3, K, WC), lambda n: (0, 0, 0)),
                pl.BlockSpec((1, 1, WC), lambda n: (n, 0, 0)),
                pl.BlockSpec((1, 1, WC), lambda n: (n, 0, 0)),
            ],
            out_specs=[
                pl.BlockSpec((1, 1, WC), lambda n: (n, 0, 0)),
                pl.BlockSpec((1, 1, WC), lambda n: (n, 0, 0)),
            ],
        ),
        compiler_params=grid_params,
    )(xf, Bm, dr, bd)

    # BatchNorm (training): biased batch stats over (N, H, W), reduced from the tiny
    # per-batch partials in XLA.  One-pass E[y^2]-E[y]^2 in f32 (clamped at 0).
    M = float(N * H * W)
    csum = s.reshape(N, W, Cout).sum(axis=(0, 1))
    csq = sq.reshape(N, W, Cout).sum(axis=(0, 1))
    mean = csum / M
    var = jnp.maximum(csq / M - mean * mean, 0.0)
    scale = gamma.astype(jnp.float32) / jnp.sqrt(var + eps)
    shift = beta.astype(jnp.float32) - mean * scale

    # Fold dropout + bias + BN affine into one multiply-add:
    #   z = conv*(drop*scale) + (bias*drop*scale + shift)
    a = jnp.tile(drop_f * scale[None, :], (1, W)).reshape(N, 1, WC)
    c = jnp.tile(bias_f[None, :] * drop_f * scale[None, :] + shift[None, :],
                 (1, W)).reshape(N, 1, WC)

    # ---- Pass B: conv recompute + folded affine + LeakyReLU, lane-dense output. ----
    z = pl.pallas_call(
        functools.partial(conv_bn_lrelu_kernel, negative_slope=negative_slope),
        out_shape=jax.ShapeDtypeStruct((N, H, WC), jnp.float32),
        grid_spec=pltpu.PrefetchScalarGridSpec(
            num_scalar_prefetch=0,
            grid=(N,),
            in_specs=[
                pl.BlockSpec((1, H + 2, K), lambda n: (n, 0, 0)),
                pl.BlockSpec((3, K, WC), lambda n: (0, 0, 0)),
                pl.BlockSpec((1, 1, WC), lambda n: (n, 0, 0)),
                pl.BlockSpec((1, 1, WC), lambda n: (n, 0, 0)),
            ],
            out_specs=pl.BlockSpec((1, H, WC), lambda n: (n, 0, 0)),
        ),
        compiler_params=grid_params,
    )(xf, Bm, a, c)

    # (N, H, W*Cout) -> (N, H, W, Cout) is a free reshape; one transpose back to NCHW.
    return jnp.transpose(z.reshape(N, H, W, Cout), (0, 3, 1, 2))


# ----------------------------------------------------------------------------
# Pure-JAX reference (same math & same bf16 rounding of the conv operands).
# ----------------------------------------------------------------------------
def reference(x_nchw, w_hwio, bias, gamma, beta, drop_scale,
              *, eps=1e-5, negative_slope=0.01):
    xb = x_nchw.astype(jnp.bfloat16).astype(jnp.float32)
    wb = w_hwio.astype(jnp.bfloat16).astype(jnp.float32)
    x = jnp.transpose(xb, (0, 2, 3, 1))
    y = lax.conv_general_dilated(
        x, wb, window_strides=(1, 1), padding=((1, 1), (1, 1)),
        dimension_numbers=("NHWC", "HWIO", "NHWC"),
        precision=lax.Precision.HIGHEST)
    y = (y + bias.reshape(1, 1, 1, -1)) * drop_scale[:, None, None, :]
    mean = jnp.mean(y, axis=(0, 1, 2))
    var = jnp.mean((y - mean) ** 2, axis=(0, 1, 2))
    z = (y - mean) / jnp.sqrt(var + eps) * gamma + beta
    z = jnp.where(z >= 0, z, negative_slope * z)
    return jnp.transpose(z, (0, 3, 1, 2))


if __name__ == "__main__":
    key = jax.random.PRNGKey(0)
    k_x, k_w, k_b, k_g, k_bt, k_d = jax.random.split(key, 6)

    N, Cin, Cout, H, W = 2, 4, 8, 16, 16
    p_drop = 0.5

    x = jax.random.normal(k_x, (N, Cin, H, W), jnp.float32)            # NCHW input
    w = 0.1 * jax.random.normal(k_w, (3, 3, Cin, Cout), jnp.float32)   # HWIO weights
    b = 0.1 * jax.random.normal(k_b, (Cout,), jnp.float32)
    gamma = 1.0 + 0.1 * jax.random.normal(k_g, (Cout,), jnp.float32)   # BN weight
    beta = 0.1 * jax.random.normal(k_bt, (Cout,), jnp.float32)         # BN bias

    # Dropout2d channel mask (deterministic), scaled by 1/(1-p).
    keep = jax.random.bernoulli(k_d, 1.0 - p_drop, (N, Cout))
    drop_scale = keep.astype(jnp.float32) / (1.0 - p_drop)

    fwd = jax.jit(conv_dropout_norm_nonlin)
    out = jax.block_until_ready(fwd(x, w, b, gamma, beta, drop_scale))

    ref = reference(x, w, b, gamma, beta, drop_scale)
    assert out.shape == (N, Cout, H, W)
    assert jnp.allclose(out, ref, atol=1e-3, rtol=1e-3), "mismatch vs reference"

    print("KERNEL_OK")
</pallas_src>

<mosaic_0001>
module attributes {stable_mosaic.version = 11 : i64} {
  func.func @conv_stats_kernel(%arg0: i32, %arg1: memref<1x18x72xbf16, #tpu.memory_space<vmem>>, %arg2: memref<3x72x128xbf16, #tpu.memory_space<vmem>>, %arg3: memref<1x1x128xf32, #tpu.memory_space<vmem>>, %arg4: memref<1x1x128xf32, #tpu.memory_space<vmem>>, %arg5: memref<1x1x128xf32, #tpu.memory_space<vmem>>, %arg6: memref<1x1x128xf32, #tpu.memory_space<vmem>>) attributes {dimension_semantics = [#tpu.dimension_semantics<parallel>], iteration_bounds = array<i64: 2>, scalar_prefetch = 0 : i64, scratch_operands = 0 : i64, tpu.core_type = #tpu.core_type<tc>, window_params = [{transform_indices = @transform_0, window_bounds = array<i64: 1, 18, 72>}, {pipeline_mode = #tpu.pipeline_mode<synchronous>, transform_indices = @transform_1, window_bounds = array<i64: 3, 72, 128>}, {transform_indices = @transform_2, window_bounds = array<i64: 1, 1, 128>}, {transform_indices = @transform_3, window_bounds = array<i64: 1, 1, 128>}, {transform_indices = @transform_4, window_bounds = array<i64: 1, 1, 128>}, {transform_indices = @transform_5, window_bounds = array<i64: 1, 1, 128>}]} {
    %c0 = arith.constant 0 : index
    %c0_0 = arith.constant 0 : index
    %c0_1 = arith.constant 0 : index
    %0 = vector.load %arg1[%c0, %c0_0, %c0_1] : memref<1x18x72xbf16, #tpu.memory_space<vmem>>, vector<1x16x72xbf16>
    %1 = vector.shape_cast %0 : vector<1x16x72xbf16> to vector<16x72xbf16>
    %c0_2 = arith.constant 0 : index
    %c0_3 = arith.constant 0 : index
    %c0_4 = arith.constant 0 : index
    %2 = vector.load %arg2[%c0_2, %c0_3, %c0_4] : memref<3x72x128xbf16, #tpu.memory_space<vmem>>, vector<1x72x128xbf16>
    %3 = vector.shape_cast %2 : vector<1x72x128xbf16> to vector<72x128xbf16>
    %cst = arith.constant dense<0.000000e+00> : vector<16x128xf32>
    %4 = tpu.matmul %1, %3, %cst {dimension_numbers = #tpu.dot_dimension_numbers<[1], [0], [0], [1], [0, 0, 1, 1], [], []>} : vector<16x72xbf16>, vector<72x128xbf16>, vector<16x128xf32> -> vector<16x128xf32>
    %c0_5 = arith.constant 0 : index
    %c1 = arith.constant 1 : index
    %c0_6 = arith.constant 0 : index
    %5 = vector.load %arg1[%c0_5, %c1, %c0_6] : memref<1x18x72xbf16, #tpu.memory_space<vmem>>, vector<1x16x72xbf16>
    %6 = vector.shape_cast %5 : vector<1x16x72xbf16> to vector<16x72xbf16>
    %c1_7 = arith.constant 1 : index
    %c0_8 = arith.constant 0 : index
    %c0_9 = arith.constant 0 : index
    %7 = vector.load %arg2[%c1_7, %c0_8, %c0_9] : memref<3x72x128xbf16, #tpu.memory_space<vmem>>, vector<1x72x128xbf16>
    %8 = vector.shape_cast %7 : vector<1x72x128xbf16> to vector<72x128xbf16>
    %cst_10 = arith.constant dense<0.000000e+00> : vector<16x128xf32>
    %9 = tpu.matmul %6, %8, %cst_10 {dimension_numbers = #tpu.dot_dimension_numbers<[1], [0], [0], [1], [0, 0, 1, 1], [], []>} : vector<16x72xbf16>, vector<72x128xbf16>, vector<16x128xf32> -> vector<16x128xf32>
    %10 = arith.addf %4, %9 : vector<16x128xf32>
    %c0_11 = arith.constant 0 : index
    %c2 = arith.constant 2 : index
    %c0_12 = arith.constant 0 : index
    %11 = vector.load %arg1[%c0_11, %c2, %c0_12] : memref<1x18x72xbf16, #tpu.memory_space<vmem>>, vector<1x16x72xbf16>
    %12 = vector.shape_cast %11 : vector<1x16x72xbf16> to vector<16x72xbf16>
    %c2_13 = arith.constant 2 : index
    %c0_14 = arith.constant 0 : index
    %c0_15 = arith.constant 0 : index
    %13 = vector.load %arg2[%c2_13, %c0_14, %c0_15] : memref<3x72x128xbf16, #tpu.memory_space<vmem>>, vector<1x72x128xbf16>
    %14 = vector.shape_cast %13 : vector<1x72x128xbf16> to vector<72x128xbf16>
    %cst_16 = arith.constant dense<0.000000e+00> : vector<16x128xf32>
    %15 = tpu.matmul %12, %14, %cst_16 {dimension_numbers = #tpu.dot_dimension_numbers<[1], [0], [0], [1], [0, 0, 1, 1], [], []>} : vector<16x72xbf16>, vector<72x128xbf16>, vector<16x128xf32> -> vector<16x128xf32>
    %16 = arith.addf %10, %15 : vector<16x128xf32>
    %c0_17 = arith.constant 0 : index
    %c0_18 = arith.constant 0 : index
    %c0_19 = arith.constant 0 : index
    %17 = vector.load %arg3[%c0_17, %c0_18, %c0_19] : memref<1x1x128xf32, #tpu.memory_space<vmem>>, vector<1x1x128xf32>
    %18 = vector.shape_cast %17 : vector<1x1x128xf32> to vector<1x128xf32>
    %19 = vector.broadcast %18 : vector<1x128xf32> to vector<16x128xf32>
    %20 = arith.mulf %16, %19 : vector<16x128xf32>
    %c0_20 = arith.constant 0 : index
    %c0_21 = arith.constant 0 : index
    %c0_22 = arith.constant 0 : index
    %21 = vector.load %arg4[%c0_20, %c0_21, %c0_22] : memref<1x1x128xf32, #tpu.memory_space<vmem>>, vector<1x1x128xf32>
    %22 = vector.shape_cast %21 : vector<1x1x128xf32> to vector<1x128xf32>
    %23 = vector.broadcast %22 : vector<1x128xf32> to vector<16x128xf32>
    %24 = arith.addf %20, %23 : vector<16x128xf32>
    %cst_23 = arith.constant dense<0.000000e+00> : vector<128xf32>
    %25 = vector.multi_reduction <add>, %24, %cst_23 [0] : vector<16x128xf32> to vector<128xf32>
    %26 = vector.shape_cast %25 : vector<128xf32> to vector<1x128xf32>
    %27 = vector.shape_cast %26 : vector<1x128xf32> to vector<1x1x128xf32>
    %c0_24 = arith.constant 0 : index
    %c0_25 = arith.constant 0 : index
    %c0_26 = arith.constant 0 : index
    %28 = vector.load %arg5[%c0_24, %c0_25, %c0_26] : memref<1x1x128xf32, #tpu.memory_space<vmem>>, vector<1x1x128xf32>
    tpu.vector_store %arg5[%c0_24, %c0_25, %c0_26], %27 {strides = array<i32>} : memref<1x1x128xf32, #tpu.memory_space<vmem>>, vector<1x1x128xf32>,
    %29 = arith.mulf %24, %24 : vector<16x128xf32>
    %cst_27 = arith.constant dense<0.000000e+00> : vector<128xf32>
    %30 = vector.multi_reduction <add>, %29, %cst_27 [0] : vector<16x128xf32> to vector<128xf32>
    %31 = vector.shape_cast %30 : vector<128xf32> to vector<1x128xf32>
    %32 = vector.shape_cast %31 : vector<1x128xf32> to vector<1x1x128xf32>
    %c0_28 = arith.constant 0 : index
    %c0_29 = arith.constant 0 : index
    %c0_30 = arith.constant 0 : index
    %33 = vector.load %arg6[%c0_28, %c0_29, %c0_30] : memref<1x1x128xf32, #tpu.memory_space<vmem>>, vector<1x1x128xf32>
    tpu.vector_store %arg6[%c0_28, %c0_29, %c0_30], %32 {strides = array<i32>} : memref<1x1x128xf32, #tpu.memory_space<vmem>>, vector<1x1x128xf32>,
    return
  }
  func.func @transform_0(%arg0: i32) -> (i32, i32, i32) {
    %c0_i32 = arith.constant 0 : i32
    %c0_i32_0 = arith.constant 0 : i32
    %c0_i32_1 = arith.constant 0 : i32
    return %arg0, %c0_i32, %c0_i32_0 : i32, i32, i32
  }
  func.func @transform_1(%arg0: i32) -> (i32, i32, i32) {
    %c0_i32 = arith.constant 0 : i32
    %c0_i32_0 = arith.constant 0 : i32
    %c0_i32_1 = arith.constant 0 : i32
    %c0_i32_2 = arith.constant 0 : i32
    return %c0_i32, %c0_i32_0, %c0_i32_1 : i32, i32, i32
  }
  func.func @transform_2(%arg0: i32) -> (i32, i32, i32) {
    %c0_i32 = arith.constant 0 : i32
    %c0_i32_0 = arith.constant 0 : i32
    %c0_i32_1 = arith.constant 0 : i32
    return %arg0, %c0_i32, %c0_i32_0 : i32, i32, i32
  }
  func.func @transform_3(%arg0: i32) -> (i32, i32, i32) {
    %c0_i32 = arith.constant 0 : i32
    %c0_i32_0 = arith.constant 0 : i32
    %c0_i32_1 = arith.constant 0 : i32
    return %arg0, %c0_i32, %c0_i32_0 : i32, i32, i32
  }
  func.func @transform_4(%arg0: i32) -> (i32, i32, i32) {
    %c0_i32 = arith.constant 0 : i32
    %c0_i32_0 = arith.constant 0 : i32
    %c0_i32_1 = arith.constant 0 : i32
    return %arg0, %c0_i32, %c0_i32_0 : i32, i32, i32
  }
  func.func @transform_5(%arg0: i32) -> (i32, i32, i32) {
    %c0_i32 = arith.constant 0 : i32
    %c0_i32_0 = arith.constant 0 : i32
    %c0_i32_1 = arith.constant 0 : i32
    return %arg0, %c0_i32, %c0_i32_0 : i32, i32, i32
  }
}

module attributes {stable_mosaic.version = 11 : i64} {
  func.func @conv_bn_lrelu_kernel(%arg0: i32, %arg1: memref<1x18x72xbf16, #tpu.memory_space<vmem>>, %arg2: memref<3x72x128xbf16, #tpu.memory_space<vmem>>, %arg3: memref<1x1x128xf32, #tpu.memory_space<vmem>>, %arg4: memref<1x1x128xf32, #tpu.memory_space<vmem>>, %arg5: memref<1x16x128xf32, #tpu.memory_space<vmem>>) attributes {dimension_semantics = [#tpu.dimension_semantics<parallel>], iteration_bounds = array<i64: 2>, scalar_prefetch = 0 : i64, scratch_operands = 0 : i64, tpu.core_type = #tpu.core_type<tc>, window_params = [{transform_indices = @transform_0, window_bounds = array<i64: 1, 18, 72>}, {pipeline_mode = #tpu.pipeline_mode<synchronous>, transform_indices = @transform_1, window_bounds = array<i64: 3, 72, 128>}, {transform_indices = @transform_2, window_bounds = array<i64: 1, 1, 128>}, {transform_indices = @transform_3, window_bounds = array<i64: 1, 1, 128>}, {transform_indices = @transform_4, window_bounds = array<i64: 1, 16, 128>}]} {
    %c0 = arith.constant 0 : index
    %c0_0 = arith.constant 0 : index
    %c0_1 = arith.constant 0 : index
    %0 = vector.load %arg1[%c0, %c0_0, %c0_1] : memref<1x18x72xbf16, #tpu.memory_space<vmem>>, vector<1x16x72xbf16>
    %1 = vector.shape_cast %0 : vector<1x16x72xbf16> to vector<16x72xbf16>
    %c0_2 = arith.constant 0 : index
    %c0_3 = arith.constant 0 : index
    %c0_4 = arith.constant 0 : index
    %2 = vector.load %arg2[%c0_2, %c0_3, %c0_4] : memref<3x72x128xbf16, #tpu.memory_space<vmem>>, vector<1x72x128xbf16>
    %3 = vector.shape_cast %2 : vector<1x72x128xbf16> to vector<72x128xbf16>
    %cst = arith.constant dense<0.000000e+00> : vector<16x128xf32>
    %4 = tpu.matmul %1, %3, %cst {dimension_numbers = #tpu.dot_dimension_numbers<[1], [0], [0], [1], [0, 0, 1, 1], [], []>} : vector<16x72xbf16>, vector<72x128xbf16>, vector<16x128xf32> -> vector<16x128xf32>
    %c0_5 = arith.constant 0 : index
    %c1 = arith.constant 1 : index
    %c0_6 = arith.constant 0 : index
    %5 = vector.load %arg1[%c0_5, %c1, %c0_6] : memref<1x18x72xbf16, #tpu.memory_space<vmem>>, vector<1x16x72xbf16>
    %6 = vector.shape_cast %5 : vector<1x16x72xbf16> to vector<16x72xbf16>
    %c1_7 = arith.constant 1 : index
    %c0_8 = arith.constant 0 : index
    %c0_9 = arith.constant 0 : index
    %7 = vector.load %arg2[%c1_7, %c0_8, %c0_9] : memref<3x72x128xbf16, #tpu.memory_space<vmem>>, vector<1x72x128xbf16>
    %8 = vector.shape_cast %7 : vector<1x72x128xbf16> to vector<72x128xbf16>
    %cst_10 = arith.constant dense<0.000000e+00> : vector<16x128xf32>
    %9 = tpu.matmul %6, %8, %cst_10 {dimension_numbers = #tpu.dot_dimension_numbers<[1], [0], [0], [1], [0, 0, 1, 1], [], []>} : vector<16x72xbf16>, vector<72x128xbf16>, vector<16x128xf32> -> vector<16x128xf32>
    %10 = arith.addf %4, %9 : vector<16x128xf32>
    %c0_11 = arith.constant 0 : index
    %c2 = arith.constant 2 : index
    %c0_12 = arith.constant 0 : index
    %11 = vector.load %arg1[%c0_11, %c2, %c0_12] : memref<1x18x72xbf16, #tpu.memory_space<vmem>>, vector<1x16x72xbf16>
    %12 = vector.shape_cast %11 : vector<1x16x72xbf16> to vector<16x72xbf16>
    %c2_13 = arith.constant 2 : index
    %c0_14 = arith.constant 0 : index
    %c0_15 = arith.constant 0 : index
    %13 = vector.load %arg2[%c2_13, %c0_14, %c0_15] : memref<3x72x128xbf16, #tpu.memory_space<vmem>>, vector<1x72x128xbf16>
    %14 = vector.shape_cast %13 : vector<1x72x128xbf16> to vector<72x128xbf16>
    %cst_16 = arith.constant dense<0.000000e+00> : vector<16x128xf32>
    %15 = tpu.matmul %12, %14, %cst_16 {dimension_numbers = #tpu.dot_dimension_numbers<[1], [0], [0], [1], [0, 0, 1, 1], [], []>} : vector<16x72xbf16>, vector<72x128xbf16>, vector<16x128xf32> -> vector<16x128xf32>
    %16 = arith.addf %10, %15 : vector<16x128xf32>
    %c0_17 = arith.constant 0 : index
    %c0_18 = arith.constant 0 : index
    %c0_19 = arith.constant 0 : index
    %17 = vector.load %arg3[%c0_17, %c0_18, %c0_19] : memref<1x1x128xf32, #tpu.memory_space<vmem>>, vector<1x1x128xf32>
    %18 = vector.shape_cast %17 : vector<1x1x128xf32> to vector<1x128xf32>
    %19 = vector.broadcast %18 : vector<1x128xf32> to vector<16x128xf32>
    %20 = arith.mulf %16, %19 : vector<16x128xf32>
    %c0_20 = arith.constant 0 : index
    %c0_21 = arith.constant 0 : index
    %c0_22 = arith.constant 0 : index
    %21 = vector.load %arg4[%c0_20, %c0_21, %c0_22] : memref<1x1x128xf32, #tpu.memory_space<vmem>>, vector<1x1x128xf32>
    %22 = vector.shape_cast %21 : vector<1x1x128xf32> to vector<1x128xf32>
    %23 = vector.broadcast %22 : vector<1x128xf32> to vector<16x128xf32>
    %24 = arith.addf %20, %23 : vector<16x128xf32>
    %cst_23 = arith.constant 0.000000e+00 : f32
    %25 = vector.broadcast %cst_23 : f32 to vector<16x128xf32>
    %26 = arith.cmpf oge, %24, %25 : vector<16x128xf32>
    %cst_24 = arith.constant 0.00999999977 : f32
    %27 = vector.broadcast %cst_24 : f32 to vector<16x128xf32>
    %28 = arith.mulf %27, %24 : vector<16x128xf32>
    %29 = arith.select %26, %24, %28 : vector<16x128xi1>, vector<16x128xf32>
    %30 = vector.shape_cast %29 : vector<16x128xf32> to vector<1x16x128xf32>
    %c0_25 = arith.constant 0 : index
    %c0_26 = arith.constant 0 : index
    %c0_27 = arith.constant 0 : index
    %31 = vector.load %arg5[%c0_25, %c0_26, %c0_27] : memref<1x16x128xf32, #tpu.memory_space<vmem>>, vector<1x16x128xf32>
    tpu.vector_store %arg5[%c0_25, %c0_26, %c0_27], %30 {strides = array<i32>} : memref<1x16x128xf32, #tpu.memory_space<vmem>>, vector<1x16x128xf32>,
    return
  }
  func.func @transform_0(%arg0: i32) -> (i32, i32, i32) {
    %c0_i32 = arith.constant 0 : i32
    %c0_i32_0 = arith.constant 0 : i32
    %c0_i32_1 = arith.constant 0 : i32
    return %arg0, %c0_i32, %c0_i32_0 : i32, i32, i32
  }
  func.func @transform_1(%arg0: i32) -> (i32, i32, i32) {
    %c0_i32 = arith.constant 0 : i32
    %c0_i32_0 = arith.constant 0 : i32
    %c0_i32_1 = arith.constant 0 : i32
    %c0_i32_2 = arith.constant 0 : i32
    return %c0_i32, %c0_i32_0, %c0_i32_1 : i32, i32, i32
  }
  func.func @transform_2(%arg0: i32) -> (i32, i32, i32) {
    %c0_i32 = arith.constant 0 : i32
    %c0_i32_0 = arith.constant 0 : i32
    %c0_i32_1 = arith.constant 0 : i32
    return %arg0, %c0_i32, %c0_i32_0 : i32, i32, i32
  }
  func.func @transform_3(%arg0: i32) -> (i32, i32, i32) {
    %c0_i32 = arith.constant 0 : i32
    %c0_i32_0 = arith.constant 0 : i32
    %c0_i32_1 = arith.constant 0 : i32
    return %arg0, %c0_i32, %c0_i32_0 : i32, i32, i32
  }
  func.func @transform_4(%arg0: i32) -> (i32, i32, i32) {
    %c0_i32 = arith.constant 0 : i32
    %c0_i32_0 = arith.constant 0 : i32
    %c0_i32_1 = arith.constant 0 : i32
    return %arg0, %c0_i32, %c0_i32_0 : i32, i32, i32
  }
}

</mosaic_0001>

<bundles_post_ra>
// kernel: conv_dropout_norm_nonlin.2
= control target key start
LH: loop header
LB: loop body
LE: loop exit
PB: predicated region body
PF: predicated region fallthrough
CT: control target
= control target key end

     0   :  { %s855_s18 = smov 0   ;;  %s966_s0 = inlined_call_operand.vmem [shape: bf16[2,18,72], index: 0, kind: input, shape index: {}]   ;;  %s967_s1 = inlined_call_operand.vmem [shape: bf16[3,72,128], index: 1, kind: input, shape index: {}]   ;;  %s968_s2 = inlined_call_operand.vmem [shape: f32[2,1,128], index: 2, kind: input, shape index: {}]   ;;  %s969_s3 = inlined_call_operand.vmem [shape: f32[2,1,128], index: 3, kind: input, shape index: {}]   ;;  %s970_s4 = inlined_call_operand.vmem [shape: f32[2,1,128], index: 4, kind: output, shape index: {0}]   ;;  %s971_s5 = inlined_call_operand.vmem [shape: f32[2,1,128], index: 5, kind: output, shape index: {1}]  }
   0x1 LB: > { %s671_s19 = sadd.s32 4294967295, %s821_s18   ;;  %p675_p0 = scmp.ge.s32.totalorder %s821_s18, 1  ;;  %s821_s18 = sphi %s855_s18, %s16_s18  }
   0x2   : > { %p206_p1 = scmp.lt.s32.totalorder %s821_s18, 3 }
   0x4   : > { %p207_p2 = pnand %p675_p0, %p206_p1 }
   0x5   : > { %v797_v0 = vld [vmem:[%s967_s1] sm:$0xff] (!%p207_p2)   ;;  %v823_v1 = vmov (!%p207_p2), 0.0   ;;  %v798_v2 = vld [vmem:[%s967_s1 + $0x8] sm:$0xff] (!%p207_p2)   ;;  %vm824_vm0 = vmmov (!%p207_p2), 0   ;;  %p241_p3 = scmp.lt.s32.totalorder (!%p207_p2), %s671_s19, 1  ;;  %v799_v4 = vld [vmem:[%s967_s1 + $0x10] sm:$0xff] (!%p207_p2)  }
   0x6   : > { %210 = sbr.rel (%p207_p2) target bundleno = 283 (0x11b), region = 36  ;;  %752 = vmatprep.subr.bf16.mxu0 (!%p207_p2), %v823_v1  ;;  %738 = vmatprep.subr.bf16.mxu1 (!%p207_p2), %v823_v1  ;;  %v802_v3 = vld [vmem:[%s967_s1 + $0x24] sm:$0xff] (!%p207_p2)   ;;  %v806_v5 = vld [vmem:[%s967_s1 + $0x2c] sm:$0xff] (!%p207_p2)   ;;  %v800_v6 = vld [vmem:[%s967_s1 + $0x18] sm:$0xff] (!%p207_p2)   ;;  %vm333_vm1 = vcmask (!%p207_p2), 1043456   ;;  %vm329_vm2 = vcmask (!%p207_p2), 588800  }
   0x7   : > { %753 = vmatpush3.bf16.msra.mxu0 (!%p207_p2), %v797_v0  ;;  %762 = vmatprep.mubr.msk.bf16.mxu0 (!%p207_p2), %vm824_vm0, %v823_v1  ;;  %v801_v7 = vld [vmem:[%s967_s1 + $0x20] ss:$0 sps:$4 sm:$0xff] (!%p207_p2)   ;;  %v808_v10 = vld [vmem:[%s967_s1 + $0x34] sm:$0xff] (!%p207_p2)   ;;  %v812_v17 = vld [vmem:[%s967_s1 + $0x44] ss:$0 sps:$4 sm:$0xff] (!%p207_p2)   ;;  %vm465_vm4 = vcmask (!%p207_p2), 1046528  }
   0x8   : > { %754 = vmatprep.subr.bf16.mxu0 (!%p207_p2), %v823_v1  ;;  %748 = vmatprep.mubr.msk.bf16.mxu1 (!%p207_p2), %vm824_vm0, %v823_v1  ;;  %v408_v12 = vsel (!%p207_p2), %vm333_vm1, %v801_v7, 0  ;;  %v810_v13 = vld [vmem:[%s967_s1 + $0x3c] sm:$0xff] (!%p207_p2)   ;;  %v805_v20 = vld [vmem:[%s967_s1 + $0x48] sm:$0xff] (!%p207_p2)   ;;  %v335_v23 = vsel (!%p207_p2), %vm333_vm1, %v812_v17, 0  ;;  %vm289_vm3 = vsmask.f32 (!%p207_p2), 7424 }
   0x9   : > { %739 = vmatpush3.bf16.msra.mxu1 (!%p207_p2), %v802_v3  ;;  %v807_v24 = vld [vmem:[%s967_s1 + $0x50] sm:$0xff] (!%p207_p2)   ;;  %v809_v26 = vld [vmem:[%s967_s1 + $0x58] sm:$0xff] (!%p207_p2)   ;;  %v811_v29 = vld [vmem:[%s967_s1 + $0x60] sm:$0xff] (!%p207_p2)  }
   0xa   : > { %740 = vmatprep.subr.bf16.mxu1 (!%p207_p2), %v823_v1  ;;  %v814_v30 = vld [vmem:[%s967_s1 + $0x68] ss:$0 sps:$4 sm:$0xff] (!%p207_p2)  }
   0xb   : > { %755 = vmatpush3.bf16.msra.mxu0 (!%p207_p2), %v798_v2  ;;  %v500_v33 = vsel (!%p207_p2), %vm333_vm1, %v814_v30, 0 }
   0xc   : > { %756 = vmatprep.subr.bf16.mxu0 (!%p207_p2), %v823_v1 }
   0xd   : > { %s973_s19 = smov (!%p241_p3, %s671_s19), 1  ;;  %741 = vmatpush3.bf16.msra.mxu1 %v806_v5 }
   0xe   : > { %s786_s28 = smul.u32 12, %s973_s19  ;;  %742 = vmatprep.subr.bf16.mxu1 %v823_v1  ;;  %s248_s8 = scalar_lea.vmem %s968_s2, %s973_s19 }
   0xf   : > { %757 = vmatpush3.bf16.msra.mxu0 %v799_v4  ;;  %s251_s11 = scalar_lea.vmem %s969_s3, %s973_s19  ;;  %v716_v40 = vld [vmem:[%s248_s8] ss:$0 sm:$0xff]  ;;  %s254_s14 = scalar_lea.vmem %s970_s4, %s973_s19 }
  0x10   : > { %s896_s10 = scalar_lea.vmem %s966_s0, %s786_s28  ;;  %758 = vmatprep.subr.bf16.mxu0 %v823_v1  ;;  %v717_v43 = vld [vmem:[%s251_s11] ss:$0 sm:$0xff]  ;;  %s257_s17 = scalar_lea.vmem %s971_s5, %s973_s19 }
  0x11   : > { %v259_v8 = vld [vmem:[%s896_s10] sm:$0xf]  ;;  %v260_v9 = vld [vmem:[%s896_s10 + $0x4] sm:$0xf]  ;;  %743 = vmatpush3.bf16.msra.mxu1 %v808_v10 }
  0x12   : > { %v686_v11 = vcombine.low %v259_v8, %v260_v9  ;;  %v813_v14 = vld [vmem:[%s896_s10 + $0x8] ss:$0 sps:$4 sm:$0x11]   ;;  %744 = vmatprep.subr.bf16.mxu1 %v823_v1  ;;  %v451_v27 = vld [vmem:[%s896_s10] sm:$0xe] }
  0x13   : > { %759 = vmatpush3.bf16.msra.mxu0 %v800_v6  ;;  %v298_v19 = vshll.u32 %v813_v14, 16  ;;  %v709_v28 = vcombine.low %v451_v27, %v260_v9  ;;  %v467_v32 = vrot.slane %v813_v14, 1 }
  0x14   : > { %760 = vmatprep.subr.bf16.mxu0 %v823_v1  ;;  %v291_v15 = vshrl.u32 %v686_v11, 16  ;;  %v293_v16 = vshll.u32 %v686_v11, 16 }
  0x15   : > { %745 = vmatpush3.bf16.msra.mxu1 %v810_v13  ;;  %v300_v22 = vrot.slane %v298_v19, 1  ;;  %v466_v31 = vrot.slane %v709_v28, 1 }
  0x16   : > { %v295_v18 = vrot.slane %v293_v16, 1  ;;  %746 = vmatprep.subr.bf16.mxu1 %v823_v1 }
  0x17   : > { %761 = vmatpush3.bf16.msra.mxu0 %v408_v12  ;;  %v468_v34 = vsel %vm465_vm4, %v466_v31, %v467_v32 }
  0x18   : > { %766 = vmatprep.subr.bf16.mxu0 %v823_v1  ;;  %v296_v21 = vor.u32 %v295_v18, %v291_v15 }
  0x19   : > { %747 = vmatpush3.bf16.msra.mxu1 %v335_v23 }
  0x1a   : > { %763 = vmatmul.mubr.msk.bf16.vlgmr.msra.gmra.mrb[0].mxu0 %vm329_vm2, %v686_v11  ;;  %v301_v25 = vsel %vm289_vm3, %v296_v21, %v300_v22 }
  0x1b   : > { %767 = vmatpush3.bf16.msra.mxu0 %v805_v20  ;;  %776 = vmatprep.mubr.msk.bf16.mxu0 %vm824_vm0, %v823_v1 }
  0x1c   : > { %768 = vmatprep.subr.bf16.mxu0 %v823_v1  ;;  %749 = vmatmul.mubr.msk.bf16.vlgmr.msra.gmra.mrb[0].mxu1 %vm329_vm2, %v301_v25 }
  0x1f   : > { %769 = vmatpush3.bf16.msra.mxu0 %v807_v24 }
  0x20   : > { %770 = vmatprep.subr.bf16.mxu0 %v823_v1 }
  0x23   : > { %771 = vmatpush3.bf16.msra.mxu0 %v809_v26 }
  0x24   : > { %772 = vmatprep.subr.bf16.mxu0 %v823_v1 }
  0x27   : > { %773 = vmatpush3.bf16.msra.mxu0 %v811_v29 }
  0x28   : > { %774 = vmatprep.subr.bf16.mxu0 %v823_v1 }
  0x2b   : > { %775 = vmatpush3.bf16.msra.mxu0 %v500_v33 }
  0x2e   : > { %777 = vmatmul.mubr.msk.bf16.vlgmr.msra.gmra.mrb[0].mxu0 %vm329_vm2, %v468_v34 }
  0xef   : > { %v371_v35 = vpop.f32.mrb[0].mxu1 }
  0xf0   : > { %v750_v36 = vpop.f32.mrb[1].mxu1 }
  0xf1   : > { %v374_v37 = vpop.f32.mrb[2].mxu1 }
  0xf2   : > { %v751_v38 = vpop.f32.mrb[3].mxu1 }
 0x101   : > { %v536_v39 = vpop.f32.mrb[0].mxu0 }
 0x102   : > { %v780_v41 = vadd.f32 %v536_v39, %v371_v35  ;;  %v778_v42 = vpop.f32.mrb[1].mxu0 }
 0x103   : > { %v539_v44 = vpop.f32.mrb[2].mxu0 }
 0x104   : > { %v552_v45 = vmul.f32 %v780_v41, %v716_v40  ;;  %v781_v46 = vadd.f32 %v539_v44, %v374_v37  ;;  %v779_v47 = vpop.f32.mrb[3].mxu0 }
 0x106   : > { %v561_v48 = vadd.f32 %v717_v43, %v552_v45  ;;  %v553_v49 = vmul.f32 %v781_v46, %v716_v40 }
 0x108   : > { %v562_v50 = vadd.f32 %v717_v43, %v553_v49  ;;  %v571_v51 = vmul.f32 %v561_v48, %v561_v48 }
 0x10a   : > { %v563_v52 = vadd.f32 %v562_v50, %v561_v48  ;;  %v572_v53 = vmul.f32 %v562_v50, %v562_v50 }
 0x10c   : > { %v564_v54 = vrot.slane %v563_v52, 4  ;;  %v573_v55 = vadd.f32 %v572_v53, %v571_v51 }
 0x10e   : > { %v565_v56 = vadd.f32 %v564_v54, %v563_v52  ;;  %v574_v57 = vrot.slane %v573_v55, 4 }
 0x110   : > { %v566_v58 = vrot.slane %v565_v56, 2  ;;  %v575_v59 = vadd.f32 %v574_v57, %v573_v55 }
 0x112   : > { %v567_v60 = vadd.f32 %v566_v58, %v565_v56  ;;  %v576_v61 = vrot.slane %v575_v59, 2 }
 0x114   : > { %v568_v62 = vrot.slane %v567_v60, 1  ;;  %v577_v63 = vadd.f32 %v576_v61, %v575_v59 }
 0x116   : > { %v569_v0 = vadd.f32 %v568_v62, %v567_v60  ;;  %v578_v1 = vrot.slane %v577_v63, 1 }
 0x118   : > { %570 = vst [vmem:[%s254_s14] sm:$0x1] %v569_v0  ;;  %v579_v2 = vadd.f32 %v578_v1, %v577_v63 }
 0x11a   : > { %580 = vst [vmem:[%s257_s17] sm:$0x1] %v579_v2 }
 0x11b PF: > { %s16_s18 = sadd.s32 1, %s821_s18  }
 0x11c   : > { %p13_p4 = scmp.ge.s32.totalorder %s16_s18, 4  }
 0x11e   :  { %15 = sbr.rel (!%p13_p4) target bundleno = 1 (0x1), region = 86 }

// kernel: conv_dropout_norm_nonlin.3
= control target key start
LH: loop header
LB: loop body
LE: loop exit
PB: predicated region body
PF: predicated region fallthrough
CT: control target
= control target key end

     0   :  { %s794_s15 = smov 0   ;;  %s901_s0 = inlined_call_operand.vmem [shape: bf16[2,18,72], index: 0, kind: input, shape index: {}]   ;;  %s902_s1 = inlined_call_operand.vmem [shape: bf16[3,72,128], index: 1, kind: input, shape index: {}]   ;;  %s903_s2 = inlined_call_operand.vmem [shape: f32[2,1,128], index: 2, kind: input, shape index: {}]   ;;  %s904_s3 = inlined_call_operand.vmem [shape: f32[2,1,128], index: 3, kind: input, shape index: {}]   ;;  %s905_s4 = inlined_call_operand.vmem [shape: f32[2,16,128], index: 4, kind: output, shape index: {}]  }
   0x1 LB: > { %s612_s16 = sadd.s32 4294967295, %s765_s15   ;;  %p616_p0 = scmp.ge.s32.totalorder %s765_s15, 1  ;;  %s765_s15 = sphi %s794_s15, %s14_s15  }
   0x2   : > { %p178_p1 = scmp.lt.s32.totalorder %s765_s15, 3 }
   0x4   : > { %p179_p2 = pnand %p616_p0, %p178_p1 }
   0x5   : > { %v741_v0 = vld [vmem:[%s902_s1] sm:$0xff] (!%p179_p2)   ;;  %v767_v1 = vmov (!%p179_p2), 0.0   ;;  %v742_v2 = vld [vmem:[%s902_s1 + $0x8] sm:$0xff] (!%p179_p2)   ;;  %vm768_vm0 = vmmov (!%p179_p2), 0   ;;  %p210_p3 = scmp.lt.s32.totalorder (!%p179_p2), %s612_s16, 1  ;;  %v743_v4 = vld [vmem:[%s902_s1 + $0x10] sm:$0xff] (!%p179_p2)  }
   0x6   : > { %182 = sbr.rel (%p179_p2) target bundleno = 270 (0x10e), region = 36  ;;  %696 = vmatprep.subr.bf16.mxu0 (!%p179_p2), %v767_v1  ;;  %682 = vmatprep.subr.bf16.mxu1 (!%p179_p2), %v767_v1  ;;  %v746_v3 = vld [vmem:[%s902_s1 + $0x24] sm:$0xff] (!%p179_p2)   ;;  %v750_v5 = vld [vmem:[%s902_s1 + $0x2c] sm:$0xff] (!%p179_p2)   ;;  %v744_v6 = vld [vmem:[%s902_s1 + $0x18] sm:$0xff] (!%p179_p2)   ;;  %vm301_vm1 = vcmask (!%p179_p2), 1043456   ;;  %vm297_vm2 = vcmask (!%p179_p2), 588800  }
   0x7   : > { %697 = vmatpush3.bf16.msra.mxu0 (!%p179_p2), %v741_v0  ;;  %706 = vmatprep.mubr.msk.bf16.mxu0 (!%p179_p2), %vm768_vm0, %v767_v1  ;;  %v745_v7 = vld [vmem:[%s902_s1 + $0x20] ss:$0 sps:$4 sm:$0xff] (!%p179_p2)   ;;  %v752_v10 = vld [vmem:[%s902_s1 + $0x34] sm:$0xff] (!%p179_p2)   ;;  %v756_v17 = vld [vmem:[%s902_s1 + $0x44] ss:$0 sps:$4 sm:$0xff] (!%p179_p2)   ;;  %vm433_vm4 = vcmask (!%p179_p2), 1046528  }
   0x8   : > { %698 = vmatprep.subr.bf16.mxu0 (!%p179_p2), %v767_v1  ;;  %692 = vmatprep.mubr.msk.bf16.mxu1 (!%p179_p2), %vm768_vm0, %v767_v1  ;;  %v376_v12 = vsel (!%p179_p2), %vm301_vm1, %v745_v7, 0  ;;  %v754_v13 = vld [vmem:[%s902_s1 + $0x3c] sm:$0xff] (!%p179_p2)   ;;  %v749_v20 = vld [vmem:[%s902_s1 + $0x48] sm:$0xff] (!%p179_p2)   ;;  %v303_v23 = vsel (!%p179_p2), %vm301_vm1, %v756_v17, 0  ;;  %vm257_vm3 = vsmask.f32 (!%p179_p2), 7424 }
   0x9   : > { %683 = vmatpush3.bf16.msra.mxu1 (!%p179_p2), %v746_v3  ;;  %v751_v24 = vld [vmem:[%s902_s1 + $0x50] sm:$0xff] (!%p179_p2)   ;;  %v753_v26 = vld [vmem:[%s902_s1 + $0x58] sm:$0xff] (!%p179_p2)   ;;  %v755_v29 = vld [vmem:[%s902_s1 + $0x60] sm:$0xff] (!%p179_p2)  }
   0xa   : > { %684 = vmatprep.subr.bf16.mxu1 (!%p179_p2), %v767_v1  ;;  %v758_v30 = vld [vmem:[%s902_s1 + $0x68] ss:$0 sps:$4 sm:$0xff] (!%p179_p2)  }
   0xb   : > { %699 = vmatpush3.bf16.msra.mxu0 (!%p179_p2), %v742_v2  ;;  %v468_v33 = vsel (!%p179_p2), %vm301_vm1, %v758_v30, 0 }
   0xc   : > { %700 = vmatprep.subr.bf16.mxu0 (!%p179_p2), %v767_v1 }
   0xd   : > { %s907_s16 = smov (!%p210_p3, %s612_s16), 1  ;;  %685 = vmatpush3.bf16.msra.mxu1 %v750_v5 }
   0xe   : > { %s730_s25 = smul.u32 12, %s907_s16  ;;  %686 = vmatprep.subr.bf16.mxu1 %v767_v1  ;;  %s217_s29 = scalar_lea.vmem %s903_s2, %s907_s16 }
   0xf   : > { %701 = vmatpush3.bf16.msra.mxu0 %v743_v4  ;;  %v659_v40 = vld [vmem:[%s217_s29] ss:$0 sm:$0xff]  ;;  %s663_s7 = sshll.u32 %s907_s16, 4 }
  0x10   : > { %s835_s6 = scalar_lea.vmem %s901_s0, %s730_s25  ;;  %702 = vmatprep.subr.bf16.mxu0 %v767_v1  ;;  %s225_s10 = scalar_lea.vmem %s905_s4, %s663_s7 }
  0x11   : > { %v227_v8 = vld [vmem:[%s835_s6] sm:$0xf]  ;;  %v228_v9 = vld [vmem:[%s835_s6 + $0x4] sm:$0xf]  ;;  %687 = vmatpush3.bf16.msra.mxu1 %v752_v10 }
  0x12   : > { %v629_v11 = vcombine.low %v227_v8, %v228_v9  ;;  %v757_v14 = vld [vmem:[%s835_s6 + $0x8] ss:$0 sps:$4 sm:$0x11]   ;;  %688 = vmatprep.subr.bf16.mxu1 %v767_v1  ;;  %v419_v27 = vld [vmem:[%s835_s6] sm:$0xe]  ;;  %s220_s6 = scalar_lea.vmem %s904_s3, %s907_s16 }
  0x13   : > { %703 = vmatpush3.bf16.msra.mxu0 %v744_v6  ;;  %v266_v19 = vshll.u32 %v757_v14, 16  ;;  %v652_v28 = vcombine.low %v419_v27, %v228_v9  ;;  %v435_v32 = vrot.slane %v757_v14, 1  ;;  %v660_v43 = vld [vmem:[%s220_s6] ss:$0 sm:$0xff] }
  0x14   : > { %704 = vmatprep.subr.bf16.mxu0 %v767_v1  ;;  %v259_v15 = vshrl.u32 %v629_v11, 16  ;;  %v261_v16 = vshll.u32 %v629_v11, 16 }
  0x15   : > { %689 = vmatpush3.bf16.msra.mxu1 %v754_v13  ;;  %v268_v22 = vrot.slane %v266_v19, 1  ;;  %v434_v31 = vrot.slane %v652_v28, 1 }
  0x16   : > { %v263_v18 = vrot.slane %v261_v16, 1  ;;  %690 = vmatprep.subr.bf16.mxu1 %v767_v1 }
  0x17   : > { %705 = vmatpush3.bf16.msra.mxu0 %v376_v12  ;;  %v436_v34 = vsel %vm433_vm4, %v434_v31, %v435_v32 }
  0x18   : > { %710 = vmatprep.subr.bf16.mxu0 %v767_v1  ;;  %v264_v21 = vor.u32 %v263_v18, %v259_v15 }
  0x19   : > { %691 = vmatpush3.bf16.msra.mxu1 %v303_v23 }
  0x1a   : > { %707 = vmatmul.mubr.msk.bf16.vlgmr.msra.gmra.mrb[0].mxu0 %vm297_vm2, %v629_v11  ;;  %v269_v25 = vsel %vm257_vm3, %v264_v21, %v268_v22 }
  0x1b   : > { %711 = vmatpush3.bf16.msra.mxu0 %v749_v20  ;;  %720 = vmatprep.mubr.msk.bf16.mxu0 %vm768_vm0, %v767_v1 }
  0x1c   : > { %712 = vmatprep.subr.bf16.mxu0 %v767_v1  ;;  %693 = vmatmul.mubr.msk.bf16.vlgmr.msra.gmra.mrb[0].mxu1 %vm297_vm2, %v269_v25 }
  0x1f   : > { %713 = vmatpush3.bf16.msra.mxu0 %v751_v24 }
  0x20   : > { %714 = vmatprep.subr.bf16.mxu0 %v767_v1 }
  0x23   : > { %715 = vmatpush3.bf16.msra.mxu0 %v753_v26 }
  0x24   : > { %716 = vmatprep.subr.bf16.mxu0 %v767_v1 }
  0x27   : > { %717 = vmatpush3.bf16.msra.mxu0 %v755_v29 }
  0x28   : > { %718 = vmatprep.subr.bf16.mxu0 %v767_v1 }
  0x2b   : > { %719 = vmatpush3.bf16.msra.mxu0 %v468_v33 }
  0x2e   : > { %721 = vmatmul.mubr.msk.bf16.vlgmr.msra.gmra.mrb[0].mxu0 %vm297_vm2, %v436_v34 }
  0xef   : > { %v339_v35 = vpop.f32.mrb[0].mxu1 }
  0xf0   : > { %v694_v36 = vpop.f32.mrb[1].mxu1 }
  0xf1   : > { %v342_v37 = vpop.f32.mrb[2].mxu1 }
  0xf2   : > { %v695_v38 = vpop.f32.mrb[3].mxu1 }
 0x101   : > { %v504_v39 = vpop.f32.mrb[0].mxu0 }
 0x102   : > { %v724_v41 = vadd.f32 %v504_v39, %v339_v35  ;;  %v722_v42 = vpop.f32.mrb[1].mxu0 }
 0x103   : > { %v507_v44 = vpop.f32.mrb[2].mxu0 }
 0x104   : > { %v520_v45 = vmul.f32 %v724_v41, %v659_v40  ;;  %v725_v46 = vadd.f32 %v507_v44, %v342_v37  ;;  %v723_v47 = vpop.f32.mrb[3].mxu0 }
 0x106   : > { %v529_v48 = vadd.f32 %v660_v43, %v520_v45  ;;  %v521_v49 = vmul.f32 %v725_v46, %v659_v40 }
 0x108   : > { %vm531_vm5 = vcmp.ge.f32.partialorder %v529_v48, 0.0  ;;  %v533_v50 = vmul.f32 0.01, %v529_v48  ;;  %v530_v51 = vadd.f32 %v660_v43, %v521_v49 }
 0x10a   : > { %v535_v52 = vsel %vm531_vm5, %v529_v48, %v533_v50  ;;  %vm532_vm6 = vcmp.ge.f32.partialorder %v530_v51, 0.0  ;;  %v534_v53 = vmul.f32 0.01, %v530_v51 }
 0x10b   : > { %537 = vst [vmem:[%s225_s10] sm:$0xff] %v535_v52 }
 0x10c   : > { %v536_v54 = vsel %vm532_vm6, %v530_v51, %v534_v53 }
 0x10d   : > { %538 = vst [vmem:[%s225_s10 + $0x8] sm:$0xff] %v536_v54 }
 0x10e PF: > { %s14_s15 = sadd.s32 1, %s765_s15  }
 0x10f   : > { %p11_p4 = scmp.ge.s32.totalorder %s14_s15, 4  }
 0x111   :  { %13 = sbr.rel (!%p11_p4) target bundleno = 1 (0x1), region = 74 }

</bundles_post_ra>
